<compile_context>
chip_gen: v7x
topology: tpu7x:2x2x1
jax: 0.10.0
libtpu: 0.0.40
codegen_flags: <defaults>
</compile_context>

<pallas_src>
import jax
import jax.numpy as jnp
from jax.experimental import pallas as pl
from jax.experimental.pallas import tpu as pltpu

_LANE = 128
_DEFAULT_BLOCK_ROWS = 4096  # 4096 * 128 * 4 B = 2 MiB per f32 block


def _log_compression_kernel(x_ref, o_ref):
    # Elementwise on the whole VMEM tile: abs -> VPU, log1p -> EUP.
    o_ref[...] = jnp.log1p(jnp.abs(x_ref[...]))


def log_compression(x: jax.Array, *, block_rows: int = _DEFAULT_BLOCK_ROWS) -> jax.Array:
    """Applies log(abs(x) + 1) elementwise via a Pallas TPU kernel."""
    orig_shape = x.shape
    orig_dtype = x.dtype

    n = x.size
    if n == 0:
        return x

    flat = x.reshape(-1)  # metadata-only reshape for contiguous input

    # Pad only to a multiple of 128 lanes (no-op when n % 128 == 0, which is
    # the common case for conv feature maps).  No full-tile padding.
    rem = n % _LANE
    padded_n = n if rem == 0 else n + (_LANE - rem)
    if padded_n != n:
        flat = jnp.pad(flat, (0, padded_n - n))
    rows = padded_n // _LANE
    x2d = flat.reshape(rows, _LANE)

    # Block sizing:
    #  * rows <= block_rows: single block equal to the full array shape
    #    (always a legal block shape, even if rows % 8 != 0).
    #  * otherwise: block_rows (multiple of 8) with a masked partial tail
    #    block handled by Pallas — no wrapper-side pad/slice round trip.
    blk_rows = rows if rows <= block_rows else block_rows
    grid = (pl.cdiv(rows, blk_rows),)

    itemsize = jnp.dtype(orig_dtype).itemsize
    cost = pl.CostEstimate(
        flops=padded_n,                       # the abs
        transcendentals=padded_n,             # the log1p
        bytes_accessed=2 * padded_n * itemsize,
    )

    out2d = pl.pallas_call(
        _log_compression_kernel,
        out_shape=jax.ShapeDtypeStruct((rows, _LANE), orig_dtype),
        grid=grid,
        in_specs=[pl.BlockSpec((blk_rows, _LANE), lambda i: (i, 0))],
        out_specs=pl.BlockSpec((blk_rows, _LANE), lambda i: (i, 0)),
        compiler_params=pltpu.CompilerParams(
            dimension_semantics=("parallel",),
        ),
        cost_estimate=cost,
    )(x2d)

    out_flat = out2d.reshape(-1)
    if padded_n != n:
        out_flat = out_flat[:n]
    return out_flat.reshape(orig_shape)


if __name__ == "__main__":
    key = jax.random.PRNGKey(0)
    k0, k1, k2 = jax.random.split(key, 3)

    # NCHW input consistent with how this activation is used (post-conv features).
    x = jax.random.normal(k0, (2, 4, 16, 16), dtype=jnp.float32)
    y = jax.block_until_ready(log_compression(x))
    y_ref = jnp.log(jnp.abs(x) + 1.0)
    assert y.shape == x.shape and y.dtype == x.dtype
    assert jnp.allclose(y, y_ref, atol=1e-6, rtol=1e-6)

    # Non-multiple-of-128 size: exercises the minimal (lane-only) pad path.
    x_odd = jax.random.normal(k1, (3, 5, 7), dtype=jnp.float32)  # 105 elements
    y_odd = jax.block_until_ready(log_compression(x_odd))
    assert jnp.allclose(y_odd, jnp.log(jnp.abs(x_odd) + 1.0), atol=1e-6, rtol=1e-6)

    # Multi-block grid with a partial tail block (rows=20, block_rows=8 -> grid=3).
    x_big = jax.random.normal(k2, (2, 1280), dtype=jnp.float32)  # 2560 = 20 * 128
    y_big = jax.block_until_ready(log_compression(x_big, block_rows=8))
    assert jnp.allclose(y_big, jnp.log(jnp.abs(x_big) + 1.0), atol=1e-6, rtol=1e-6)

    print("KERNEL_OK")
</pallas_src>

<mosaic_0001>
module attributes {stable_mosaic.version = 11 : i64} {
  func.func @_log_compression_kernel(%arg0: i32, %arg1: memref<16x128xf32, #tpu.memory_space<vmem>>, %arg2: memref<16x128xf32, #tpu.memory_space<vmem>>) attributes {dimension_semantics = [#tpu.dimension_semantics<parallel>], iteration_bounds = array<i64: 1>, scalar_prefetch = 0 : i64, scratch_operands = 0 : i64, tpu.core_type = #tpu.core_type<tc>, window_params = [{transform_indices = @transform_0, window_bounds = array<i64: 16, 128>}, {transform_indices = @transform_1, window_bounds = array<i64: 16, 128>}]} {
    %c0 = arith.constant 0 : index
    %c0_0 = arith.constant 0 : index
    %0 = vector.load %arg1[%c0, %c0_0] : memref<16x128xf32, #tpu.memory_space<vmem>>, vector<16x128xf32>
    %1 = math.absf %0 : vector<16x128xf32>
    %2 = math.log1p %1 : vector<16x128xf32>
    %c0_1 = arith.constant 0 : index
    %c0_2 = arith.constant 0 : index
    %3 = vector.load %arg2[%c0_1, %c0_2] : memref<16x128xf32, #tpu.memory_space<vmem>>, vector<16x128xf32>
    tpu.vector_store %arg2[%c0_1, %c0_2], %2 {strides = array<i32>} : memref<16x128xf32, #tpu.memory_space<vmem>>, vector<16x128xf32>,
    return
  }
  func.func @transform_0(%arg0: i32) -> (i32, i32) {
    %c0_i32 = arith.constant 0 : i32
    %c0_i32_0 = arith.constant 0 : i32
    return %arg0, %c0_i32 : i32, i32
  }
  func.func @transform_1(%arg0: i32) -> (i32, i32) {
    %c0_i32 = arith.constant 0 : i32
    %c0_i32_0 = arith.constant 0 : i32
    return %arg0, %c0_i32 : i32, i32
  }
}

</mosaic_0001>

<bundles_post_ra>
// kernel: tpu_custom_call.1
= control target key start
LH: loop header
LB: loop body
LE: loop exit
PB: predicated region body
PF: predicated region fallthrough
CT: control target
= control target key end

     0   :  { %6 = vsyncpa [#allocation3], 0  ;;  %s164_s0 = inlined_call_operand.hbm [shape: f32[16,128], index: 0, kind: input, shape index: {}]   ;;  %s165_s1 = inlined_call_operand.hbm [shape: f32[16,128], index: 1, kind: output, shape index: {}]  }
   0x1   :  { %7 = vsyncpa [#allocation4], 0  ;;  %s120_s6 = smov [#allocation2]   ;;  %s72_s10 = scalar_lea.hbm %s164_s0, 256 }
   0x2   :  { %s13_s7 = sshll.u32 %s120_s6, 4  ;;  %p73_p0 = scmp.ne.s32.totalorder %s164_s0, %s72_s10  ;;  %s14_s7 = int_to_ptr.vmem [resolvable:$true] %s13_s7 }
   0x3   :  { %p76_p1 = scmp.lt.u32.totalorder %s72_s10, %s164_s0 }
   0x5   :  { %p78_p2 = pnand %p76_p1, %p73_p0 }
   0x7   :  { %81 = shalt.err (!%p78_p2)
}
   0x8   :  { %s82_s15 = scalar_lea.vmem %s14_s7, 256  ;;  %p87_p4 = scmp.lt.s32.totalorder %s14_s7, %s14_s7 }
   0x9   :  { %p83_p3 = scmp.ne.s32.totalorder %s14_s7, %s82_s15  ;;  %p88_p5 = scmp.lt.s32.totalorder %s82_s15, %s82_s15 }
   0xb   :  { %p89_p6 = por %p88_p5, %p87_p4 }
   0xd   :  { %p90_p7 = pnand %p89_p6, %p83_p3 }
   0xf   :  { %93 = shalt.err (!%p90_p7)
}
  0x10   :  { %s121_s16 = smov 128   ;;  %s122_s17 = smov 8  }
  0x11   :  { %19 = dma.hbm_to_vmem [thread:$0]  %s164_s0, 256, %s14_s7, [#allocation3], %s121_s16, %s121_s16, %s122_s17  }
  0x12   :  { %116 = dma.done.wait [#allocation3], 256  }
  0x13   :  { %117 = vsyncadd [#allocation3], 4294967040  ;;  %v23_v0 = vld [vmem:[#allocation2] sm:$0xff]  ;;  %v24_v1 = vld [vmem:[#allocation2 + $0x8] sm:$0xff]  ;;  %s123_s20 = smov [#allocation5]  }
  0x14   :  { %v25_v2 = vand.u32 2147483647, %v23_v0  ;;  %v26_v3 = vand.u32 2147483647, %v24_v1  ;;  %s52_s0 = sshll.u32 %s123_s20, 4  ;;  %s53_s0 = int_to_ptr.vmem [resolvable:$true] %s52_s0 }
  0x15   :  { %s94_s21 = scalar_lea.vmem %s53_s0, 256  ;;  %p99_p9 = scmp.lt.s32.totalorder %s53_s0, %s53_s0 }
  0x16   :  { %v27_v4 = vadd.f32 1.0, %v25_v2  ;;  %v36_v5 = vadd.f32 1.0, %v26_v3  ;;  %v30_v6 = vmul.f32 -0.5, %v25_v2  ;;  %v39_v7 = vmul.f32 -0.5, %v26_v3  ;;  %p95_p8 = scmp.ne.s32.totalorder %s53_s0, %s94_s21  ;;  %p100_p10 = scmp.lt.s32.totalorder %s94_s21, %s94_s21 }
  0x17   :  { %vm34_vm0 = vcmp.lt.f32.partialorder %v25_v2, 0.0004427343  ;;  %vm43_vm1 = vcmp.lt.f32.partialorder %v26_v3, 0.0004427343 }
  0x18   :  { %68 = vlog2.f32 %v27_v4  ;;  %v31_v8 = vadd.f32 1.0, %v30_v6  ;;  %v40_v9 = vadd.f32 1.0, %v39_v7  ;;  %p101_p11 = por %p100_p10, %p99_p9 }
  0x19   :  { %70 = vlog2.f32 %v36_v5 }
  0x1a   :  { %v32_v10 = vmul.f32 %v31_v8, %v25_v2  ;;  %v41_v12 = vmul.f32 %v40_v9, %v26_v3  ;;  %p102_p12 = pnand %p101_p11, %p95_p8 }
  0x22   :  { %v69_v11 = vpop.eup %68 }
  0x23   :  { %v71_v13 = vpop.eup %70  ;;  %v29_v14 = vmul.f32 0.6931472, %v69_v11 }
  0x24   :  { %v38_v15 = vmul.f32 0.6931472, %v71_v13 }
  0x25   :  { %v35_v16 = vsel %vm34_vm0, %v32_v10, %v29_v14 }
  0x26   :  { %45 = vst [vmem:[#allocation5] sm:$0xff] %v35_v16  ;;  %v44_v17 = vsel %vm43_vm1, %v41_v12, %v38_v15 }
  0x27   :  { %46 = vst [vmem:[#allocation5 + $0x8] sm:$0xff] %v44_v17 }
  0x28   :  { %105 = shalt.err (!%p102_p12)
}
  0x29   :  { %s106_s24 = scalar_lea.hbm %s165_s1, 256 }
  0x2a   :  { %p107_p13 = scmp.ne.s32.totalorder %s165_s1, %s106_s24  ;;  %p110_p0 = scmp.lt.u32.totalorder %s106_s24, %s165_s1 }
  0x2c   :  { %p112_p1 = pnand %p110_p0, %p107_p13 }
  0x2e   :  { %115 = shalt.err (!%p112_p1)
}
  0x2f   :  { %58 = dma.vmem_to_hbm [thread:$0]  %s53_s0, 256, %s165_s1, [#allocation4], %s121_s16, %s121_s16, %s122_s17  }
  0x30   :  { %118 = dma.done.wait [#allocation4], 256  }
  0x31   :  { %119 = vsyncadd [#allocation4], 4294967040 }
  0x32   :  { %62 = vsyncpa [#allocation3], 1 }
  0x33   :  { %63 = vsyncpa [#allocation4], 1 }

</bundles_post_ra>
